<compile_context>
chip_gen: v7x
topology: tpu7x:2x2x1
jax: 0.10.0
libtpu: 0.0.40
codegen_flags: <defaults>
</compile_context>

<pallas_src>
import functools

import jax
import jax.numpy as jnp
from jax.experimental import pallas as pl
from jax.experimental.pallas import tpu as pltpu

_N_SUMS = 7     # number of scalar reductions produced by the kernel
_OUT_ROWS = 8   # padded to a full sublane tile


def _choose_block_h(H, W, bytes_target):
    """Rows per tile: ~bytes_target of f32 per input, multiple of 8 (or full H)."""
    rows = max(1, bytes_target // (W * 4))
    if rows >= H:
        return H                                   # whole-H block (always legal)
    bh = max(8, (rows // 8) * 8)
    # Prefer a multiple-of-8 divisor of H (avoids masking a ragged tail tile),
    # but don't shrink the tile below half the target.
    for cand in range(bh, max(bh // 2, 8) - 1, -8):
        if H % cand == 0:
            return cand
    return bh                                      # ragged; kernel masks the tail


def _make_kernel(block_h, H, W, ragged):
    def kernel(b_ref, tb_ref, th_ref, gt_ref, m_ref, tmap_ref, tmask_ref, out_ref):
        # Output block is resident across the (reduction) H-tile axis.
        @pl.when(pl.program_id(1) == 0)
        def _init():
            out_ref[...] = jnp.zeros_like(out_ref)

        f32 = jnp.float32
        b = b_ref[...].astype(f32)        # binary prediction
        tb = tb_ref[...].astype(f32)      # thresh_binary prediction
        th = th_ref[...].astype(f32)      # thresh prediction
        g = gt_ref[...].astype(f32)       # gt
        m = m_ref[...].astype(f32)        # mask
        tmap = tmap_ref[...].astype(f32)  # thresh_map
        tmask = tmask_ref[...].astype(f32)  # thresh_mask

        if ragged:
            # Last H tile reads past the array: zero the garbage rows so they
            # cannot perturb (or NaN-poison) any of the sums.
            row = jax.lax.broadcasted_iota(jnp.int32, (block_h, W), 0)
            valid = (row + pl.program_id(1) * block_h) < H
            zero = jnp.zeros((), f32)
            b = jnp.where(valid, b, zero)
            tb = jnp.where(valid, tb, zero)
            th = jnp.where(valid, th, zero)
            g = jnp.where(valid, g, zero)
            m = jnp.where(valid, m, zero)
            tmap = jnp.where(valid, tmap, zero)
            tmask = jnp.where(valid, tmask, zero)

        gm = g * m
        sums = (
            jnp.sum(b * gm, axis=0, keepdims=True),                      # sum(p*g*m)
            jnp.sum(gm, axis=0, keepdims=True),                          # sum(g*m)
            jnp.sum(b * m, axis=0, keepdims=True),                       # sum(p*m)
            jnp.sum(tb * gm, axis=0, keepdims=True),                     # sum(tb*g*m)
            jnp.sum(tb * m, axis=0, keepdims=True),                      # sum(tb*m)
            jnp.sum(jnp.abs(th - tmap) * tmask, axis=0, keepdims=True),  # L1 numerator
            jnp.sum(tmask, axis=0, keepdims=True),                       # sum(tmask)
        )
        for k, s in enumerate(sums):
            out_ref[k:k + 1, :] += s

    return kernel


def _partial_sums(b, tb, th, g, m, tmap, tmask, block_bytes):
    """Returns per-batch, per-lane partial sums of shape (N, 8, W)."""
    N, H, W = b.shape
    block_h = _choose_block_h(H, W, block_bytes)
    n_h = pl.cdiv(H, block_h)
    ragged = (H % block_h) != 0

    in_spec = pl.BlockSpec((None, block_h, W), lambda n, h: (n, h, 0))
    out_spec = pl.BlockSpec((None, _OUT_ROWS, W), lambda n, h: (n, 0, 0))

    inputs = (b, tb, th, g, m, tmap, tmask)
    in_bytes = sum(x.size * x.dtype.itemsize for x in inputs)
    cost = pl.CostEstimate(
        flops=15 * N * H * W,              # ~8 mul/sub/abs + 7 reduction adds / pixel
        transcendentals=0,
        bytes_accessed=in_bytes + N * _OUT_ROWS * W * 4,
    )

    return pl.pallas_call(
        _make_kernel(block_h, H, W, ragged),
        out_shape=jax.ShapeDtypeStruct((N, _OUT_ROWS, W), jnp.float32),
        grid_spec=pltpu.PrefetchScalarGridSpec(
            num_scalar_prefetch=0,
            grid=(N, n_h),                  # reduction (H tiles) is the last axis
            in_specs=[in_spec] * 7,
            out_specs=out_spec,
        ),
        compiler_params=pltpu.CompilerParams(
            # Batch axis is parallel (shards across v7x's two TensorCores);
            # H-tile axis is the accumulation axis.
            dimension_semantics=("parallel", "arbitrary"),
            vmem_limit_bytes=32 * 1024 * 1024,  # 7 x 2 x ~1 MiB tiles + headroom
        ),
        cost_estimate=cost,
    )(*inputs)


def _prep(x):
    """Squeeze the NCHW channel dim (C==1) and make integer/bool inputs float."""
    if x.ndim == 4:
        x = x[:, 0]   # contiguous full slab when C == 1 -> effectively a reshape
    if not jnp.issubdtype(x.dtype, jnp.floating):
        x = x.astype(jnp.float32)
    return x


@functools.partial(
    jax.jit, static_argnames=("eps", "coverage_scale", "l1_scale", "block_bytes")
)
def l1_leaky_dice_loss(
    binary, thresh, thresh_binary, gt, mask, thresh_map, thresh_mask,
    eps=1e-6, coverage_scale=5.0, l1_scale=10.0, block_bytes=1 << 20,
):
    b = _prep(binary)
    tb = _prep(thresh_binary)
    th = _prep(thresh)
    g = _prep(gt)
    m = _prep(mask)
    tmap = _prep(thresh_map)
    tmask = _prep(thresh_mask)

    partial = _partial_sums(b, tb, th, g, m, tmap, tmask, block_bytes)  # (N, 8, W)
    sums = jnp.sum(partial, axis=(0, 2))                                # (8,)
    s_pgm, s_gm, s_pm, s_tbgm, s_tbm, s_l1, s_tmask = (
        sums[i] for i in range(_N_SUMS)
    )

    # LeakyDiceLoss on binary
    coverage = 1.0 - s_pgm / (s_gm + eps)
    excede = 1.0 - s_pgm / (s_pm + eps)
    main_loss = coverage * coverage_scale + excede

    # DiceLoss on thresh_binary
    thresh_loss = 1.0 - 2.0 * s_tbgm / (s_tbm + s_gm + eps)

    # MaskL1Loss on thresh (safe denominator: no inf/nan in the dead branch)
    safe_den = jnp.where(s_tmask == 0.0, 1.0, s_tmask)
    l1_loss = jnp.where(s_tmask == 0.0, 0.0, s_l1 / safe_den)

    loss = main_loss + thresh_loss + l1_loss * l1_scale
    metrics = dict(
        coverage=coverage, excede=excede, l1_loss=l1_loss, thresh_loss=thresh_loss
    )
    return loss, metrics


def _reference(binary, thresh, thresh_binary, gt, mask, thresh_map, thresh_mask,
               eps=1e-6, coverage_scale=5.0, l1_scale=10.0):
    """Pure-JAX mirror of the PyTorch forward, for correctness checking."""
    p = binary[:, 0].astype(jnp.float32)
    tb = thresh_binary[:, 0].astype(jnp.float32)
    th = thresh[:, 0].astype(jnp.float32)
    g = (gt[:, 0] if gt.ndim == 4 else gt).astype(jnp.float32)
    m = mask.astype(jnp.float32)
    tm = thresh_map.astype(jnp.float32)
    tmk = thresh_mask.astype(jnp.float32)

    coverage = 1.0 - jnp.sum(p * g * m) / (jnp.sum(g * m) + eps)
    excede = 1.0 - jnp.sum(p * g * m) / (jnp.sum(p * m) + eps)
    main = coverage * coverage_scale + excede
    dice = 1.0 - 2.0 * jnp.sum(tb * g * m) / (jnp.sum(tb * m) + jnp.sum(g * m) + eps)
    msum = jnp.sum(tmk)
    l1 = jnp.where(msum == 0.0, 0.0, jnp.sum(jnp.abs(th - tm) * tmk) / msum)
    return main + dice + l1 * l1_scale


if __name__ == "__main__":
    key = jax.random.PRNGKey(0)
    key_a, key_b = jax.random.split(key)

    def make_inputs(k0, N, C, H, W):
        k = jax.random.split(k0, 7)
        binary = jax.random.uniform(k[0], (N, C, H, W), jnp.float32)
        thresh = jax.random.uniform(k[1], (N, C, H, W), jnp.float32)
        thresh_binary = jax.random.uniform(k[2], (N, C, H, W), jnp.float32)
        gt = (jax.random.uniform(k[3], (N, C, H, W)) > 0.5).astype(jnp.float32)
        mask = (jax.random.uniform(k[4], (N, H, W)) > 0.2).astype(jnp.float32)
        thresh_map = jax.random.uniform(k[5], (N, H, W), jnp.float32)
        thresh_mask = (jax.random.uniform(k[6], (N, H, W)) > 0.3).astype(jnp.float32)
        return binary, thresh, thresh_binary, gt, mask, thresh_map, thresh_mask

    # Case 1: small aligned shapes -> whole-image blocks, single H tile.
    args1 = make_inputs(key_a, 2, 1, 16, 16)
    loss1, metrics1 = l1_leaky_dice_loss(*args1)
    loss1 = jax.block_until_ready(loss1)
    ref1 = _reference(*args1)
    assert jnp.allclose(loss1, ref1, rtol=1e-5, atol=1e-5), (loss1, ref1)
    for v in metrics1.values():
        jax.block_until_ready(v)

    # Case 2: exercise the tiled / ragged-H path (tiny block budget forces a
    # multi-tile grid whose last H tile is masked in-kernel).
    args2 = make_inputs(key_b, 2, 1, 20, 128)
    loss2, metrics2 = l1_leaky_dice_loss(*args2, block_bytes=8 * 128 * 4)
    loss2 = jax.block_until_ready(loss2)
    ref2 = _reference(*args2)
    assert jnp.allclose(loss2, ref2, rtol=1e-5, atol=1e-5), (loss2, ref2)
    for v in metrics2.values():
        jax.block_until_ready(v)

    print("KERNEL_OK")
</pallas_src>

<mosaic_0001>
module attributes {stable_mosaic.version = 11 : i64} {
  func.func @kernel(%arg0: i32, %arg1: i32, %arg2: memref<1x16x16xf32, #tpu.memory_space<vmem>>, %arg3: memref<1x16x16xf32, #tpu.memory_space<vmem>>, %arg4: memref<1x16x16xf32, #tpu.memory_space<vmem>>, %arg5: memref<1x16x16xf32, #tpu.memory_space<vmem>>, %arg6: memref<1x16x16xf32, #tpu.memory_space<vmem>>, %arg7: memref<1x16x16xf32, #tpu.memory_space<vmem>>, %arg8: memref<1x16x16xf32, #tpu.memory_space<vmem>>, %arg9: memref<1x8x16xf32, #tpu.memory_space<vmem>>) attributes {dimension_semantics = [#tpu.dimension_semantics<parallel>, #tpu.dimension_semantics<arbitrary>], iteration_bounds = array<i64: 2, 1>, scalar_prefetch = 0 : i64, scratch_operands = 0 : i64, tpu.core_type = #tpu.core_type<tc>, window_params = [{transform_indices = @transform_0, window_bounds = array<i64: 1, 16, 16>}, {transform_indices = @transform_1, window_bounds = array<i64: 1, 16, 16>}, {transform_indices = @transform_2, window_bounds = array<i64: 1, 16, 16>}, {transform_indices = @transform_3, window_bounds = array<i64: 1, 16, 16>}, {transform_indices = @transform_4, window_bounds = array<i64: 1, 16, 16>}, {transform_indices = @transform_5, window_bounds = array<i64: 1, 16, 16>}, {transform_indices = @transform_6, window_bounds = array<i64: 1, 16, 16>}, {transform_indices = @transform_7, window_bounds = array<i64: 1, 8, 16>}]} {
    %c0_i32 = arith.constant 0 : i32
    %0 = arith.cmpi eq, %arg1, %c0_i32 : i32
    %1 = arith.extui %0 : i1 to i32
    %c0_i32_0 = arith.constant 0 : i32
    %2 = arith.cmpi ne, %1, %c0_i32_0 : i32
    scf.if %2 {
      %cst_63 = arith.constant 0.000000e+00 : f32
      %81 = vector.broadcast %cst_63 : f32 to vector<8x16xf32>
      %c0_64 = arith.constant 0 : index
      %c0_65 = arith.constant 0 : index
      %c0_66 = arith.constant 0 : index
      %82 = vector.load %arg9[%c0_64, %c0_65, %c0_66] : memref<1x8x16xf32, #tpu.memory_space<vmem>>, vector<1x8x16xf32>
      %83 = vector.shape_cast %82 : vector<1x8x16xf32> to vector<8x16xf32>
      %84 = vector.shape_cast %81 : vector<8x16xf32> to vector<1x8x16xf32>
      tpu.vector_store %arg9[%c0_64, %c0_65, %c0_66], %84 {strides = array<i32>} : memref<1x8x16xf32, #tpu.memory_space<vmem>>, vector<1x8x16xf32>,
    } else {
    }
    %c0 = arith.constant 0 : index
    %c0_1 = arith.constant 0 : index
    %c0_2 = arith.constant 0 : index
    %3 = vector.load %arg2[%c0, %c0_1, %c0_2] : memref<1x16x16xf32, #tpu.memory_space<vmem>>, vector<1x16x16xf32>
    %4 = vector.shape_cast %3 : vector<1x16x16xf32> to vector<16x16xf32>
    %c0_3 = arith.constant 0 : index
    %c0_4 = arith.constant 0 : index
    %c0_5 = arith.constant 0 : index
    %5 = vector.load %arg3[%c0_3, %c0_4, %c0_5] : memref<1x16x16xf32, #tpu.memory_space<vmem>>, vector<1x16x16xf32>
    %6 = vector.shape_cast %5 : vector<1x16x16xf32> to vector<16x16xf32>
    %c0_6 = arith.constant 0 : index
    %c0_7 = arith.constant 0 : index
    %c0_8 = arith.constant 0 : index
    %7 = vector.load %arg4[%c0_6, %c0_7, %c0_8] : memref<1x16x16xf32, #tpu.memory_space<vmem>>, vector<1x16x16xf32>
    %8 = vector.shape_cast %7 : vector<1x16x16xf32> to vector<16x16xf32>
    %c0_9 = arith.constant 0 : index
    %c0_10 = arith.constant 0 : index
    %c0_11 = arith.constant 0 : index
    %9 = vector.load %arg5[%c0_9, %c0_10, %c0_11] : memref<1x16x16xf32, #tpu.memory_space<vmem>>, vector<1x16x16xf32>
    %10 = vector.shape_cast %9 : vector<1x16x16xf32> to vector<16x16xf32>
    %c0_12 = arith.constant 0 : index
    %c0_13 = arith.constant 0 : index
    %c0_14 = arith.constant 0 : index
    %11 = vector.load %arg6[%c0_12, %c0_13, %c0_14] : memref<1x16x16xf32, #tpu.memory_space<vmem>>, vector<1x16x16xf32>
    %12 = vector.shape_cast %11 : vector<1x16x16xf32> to vector<16x16xf32>
    %c0_15 = arith.constant 0 : index
    %c0_16 = arith.constant 0 : index
    %c0_17 = arith.constant 0 : index
    %13 = vector.load %arg7[%c0_15, %c0_16, %c0_17] : memref<1x16x16xf32, #tpu.memory_space<vmem>>, vector<1x16x16xf32>
    %14 = vector.shape_cast %13 : vector<1x16x16xf32> to vector<16x16xf32>
    %c0_18 = arith.constant 0 : index
    %c0_19 = arith.constant 0 : index
    %c0_20 = arith.constant 0 : index
    %15 = vector.load %arg8[%c0_18, %c0_19, %c0_20] : memref<1x16x16xf32, #tpu.memory_space<vmem>>, vector<1x16x16xf32>
    %16 = vector.shape_cast %15 : vector<1x16x16xf32> to vector<16x16xf32>
    %17 = arith.mulf %10, %12 : vector<16x16xf32>
    %18 = arith.mulf %4, %17 : vector<16x16xf32>
    %cst = arith.constant dense<0.000000e+00> : vector<16xf32>
    %19 = vector.multi_reduction <add>, %18, %cst [0] : vector<16x16xf32> to vector<16xf32>
    %20 = vector.shape_cast %19 : vector<16xf32> to vector<1x16xf32>
    %cst_21 = arith.constant dense<0.000000e+00> : vector<16xf32>
    %21 = vector.multi_reduction <add>, %17, %cst_21 [0] : vector<16x16xf32> to vector<16xf32>
    %22 = vector.shape_cast %21 : vector<16xf32> to vector<1x16xf32>
    %23 = arith.mulf %4, %12 : vector<16x16xf32>
    %cst_22 = arith.constant dense<0.000000e+00> : vector<16xf32>
    %24 = vector.multi_reduction <add>, %23, %cst_22 [0] : vector<16x16xf32> to vector<16xf32>
    %25 = vector.shape_cast %24 : vector<16xf32> to vector<1x16xf32>
    %26 = arith.mulf %6, %17 : vector<16x16xf32>
    %cst_23 = arith.constant dense<0.000000e+00> : vector<16xf32>
    %27 = vector.multi_reduction <add>, %26, %cst_23 [0] : vector<16x16xf32> to vector<16xf32>
    %28 = vector.shape_cast %27 : vector<16xf32> to vector<1x16xf32>
    %29 = arith.mulf %6, %12 : vector<16x16xf32>
    %cst_24 = arith.constant dense<0.000000e+00> : vector<16xf32>
    %30 = vector.multi_reduction <add>, %29, %cst_24 [0] : vector<16x16xf32> to vector<16xf32>
    %31 = vector.shape_cast %30 : vector<16xf32> to vector<1x16xf32>
    %32 = arith.subf %8, %14 : vector<16x16xf32>
    %33 = math.absf %32 : vector<16x16xf32>
    %34 = arith.mulf %33, %16 : vector<16x16xf32>
    %cst_25 = arith.constant dense<0.000000e+00> : vector<16xf32>
    %35 = vector.multi_reduction <add>, %34, %cst_25 [0] : vector<16x16xf32> to vector<16xf32>
    %36 = vector.shape_cast %35 : vector<16xf32> to vector<1x16xf32>
    %cst_26 = arith.constant dense<0.000000e+00> : vector<16xf32>
    %37 = vector.multi_reduction <add>, %16, %cst_26 [0] : vector<16x16xf32> to vector<16xf32>
    %38 = vector.shape_cast %37 : vector<16xf32> to vector<1x16xf32>
    %c0_27 = arith.constant 0 : index
    %c0_28 = arith.constant 0 : index
    %c0_29 = arith.constant 0 : index
    %39 = vector.load %arg9[%c0_27, %c0_28, %c0_29] : memref<1x8x16xf32, #tpu.memory_space<vmem>>, vector<1x1x16xf32>
    %40 = vector.shape_cast %39 : vector<1x1x16xf32> to vector<1x16xf32>
    %41 = arith.addf %40, %20 : vector<1x16xf32>
    %c0_30 = arith.constant 0 : index
    %c0_31 = arith.constant 0 : index
    %c0_32 = arith.constant 0 : index
    %42 = vector.load %arg9[%c0_30, %c0_31, %c0_32] : memref<1x8x16xf32, #tpu.memory_space<vmem>>, vector<1x1x16xf32>
    %43 = vector.shape_cast %42 : vector<1x1x16xf32> to vector<1x16xf32>
    %44 = vector.shape_cast %41 : vector<1x16xf32> to vector<1x1x16xf32>
    tpu.vector_store %arg9[%c0_30, %c0_31, %c0_32], %44 {strides = array<i32>} : memref<1x8x16xf32, #tpu.memory_space<vmem>>, vector<1x1x16xf32>,
    %c0_33 = arith.constant 0 : index
    %c1 = arith.constant 1 : index
    %c0_34 = arith.constant 0 : index
    %45 = vector.load %arg9[%c0_33, %c1, %c0_34] : memref<1x8x16xf32, #tpu.memory_space<vmem>>, vector<1x1x16xf32>
    %46 = vector.shape_cast %45 : vector<1x1x16xf32> to vector<1x16xf32>
    %47 = arith.addf %46, %22 : vector<1x16xf32>
    %c0_35 = arith.constant 0 : index
    %c1_36 = arith.constant 1 : index
    %c0_37 = arith.constant 0 : index
    %48 = vector.load %arg9[%c0_35, %c1_36, %c0_37] : memref<1x8x16xf32, #tpu.memory_space<vmem>>, vector<1x1x16xf32>
    %49 = vector.shape_cast %48 : vector<1x1x16xf32> to vector<1x16xf32>
    %50 = vector.shape_cast %47 : vector<1x16xf32> to vector<1x1x16xf32>
    tpu.vector_store %arg9[%c0_35, %c1_36, %c0_37], %50 {strides = array<i32>} : memref<1x8x16xf32, #tpu.memory_space<vmem>>, vector<1x1x16xf32>,
    %c0_38 = arith.constant 0 : index
    %c2 = arith.constant 2 : index
    %c0_39 = arith.constant 0 : index
    %51 = vector.load %arg9[%c0_38, %c2, %c0_39] : memref<1x8x16xf32, #tpu.memory_space<vmem>>, vector<1x1x16xf32>
    %52 = vector.shape_cast %51 : vector<1x1x16xf32> to vector<1x16xf32>
    %53 = arith.addf %52, %25 : vector<1x16xf32>
    %c0_40 = arith.constant 0 : index
    %c2_41 = arith.constant 2 : index
    %c0_42 = arith.constant 0 : index
    %54 = vector.load %arg9[%c0_40, %c2_41, %c0_42] : memref<1x8x16xf32, #tpu.memory_space<vmem>>, vector<1x1x16xf32>
    %55 = vector.shape_cast %54 : vector<1x1x16xf32> to vector<1x16xf32>
    %56 = vector.shape_cast %53 : vector<1x16xf32> to vector<1x1x16xf32>
    tpu.vector_store %arg9[%c0_40, %c2_41, %c0_42], %56 {strides = array<i32>} : memref<1x8x16xf32, #tpu.memory_space<vmem>>, vector<1x1x16xf32>,
    %c0_43 = arith.constant 0 : index
    %c3 = arith.constant 3 : index
    %c0_44 = arith.constant 0 : index
    %57 = vector.load %arg9[%c0_43, %c3, %c0_44] : memref<1x8x16xf32, #tpu.memory_space<vmem>>, vector<1x1x16xf32>
    %58 = vector.shape_cast %57 : vector<1x1x16xf32> to vector<1x16xf32>
    %59 = arith.addf %58, %28 : vector<1x16xf32>
    %c0_45 = arith.constant 0 : index
    %c3_46 = arith.constant 3 : index
    %c0_47 = arith.constant 0 : index
    %60 = vector.load %arg9[%c0_45, %c3_46, %c0_47] : memref<1x8x16xf32, #tpu.memory_space<vmem>>, vector<1x1x16xf32>
    %61 = vector.shape_cast %60 : vector<1x1x16xf32> to vector<1x16xf32>
    %62 = vector.shape_cast %59 : vector<1x16xf32> to vector<1x1x16xf32>
    tpu.vector_store %arg9[%c0_45, %c3_46, %c0_47], %62 {strides = array<i32>} : memref<1x8x16xf32, #tpu.memory_space<vmem>>, vector<1x1x16xf32>,
    %c0_48 = arith.constant 0 : index
    %c4 = arith.constant 4 : index
    %c0_49 = arith.constant 0 : index
    %63 = vector.load %arg9[%c0_48, %c4, %c0_49] : memref<1x8x16xf32, #tpu.memory_space<vmem>>, vector<1x1x16xf32>
    %64 = vector.shape_cast %63 : vector<1x1x16xf32> to vector<1x16xf32>
    %65 = arith.addf %64, %31 : vector<1x16xf32>
    %c0_50 = arith.constant 0 : index
    %c4_51 = arith.constant 4 : index
    %c0_52 = arith.constant 0 : index
    %66 = vector.load %arg9[%c0_50, %c4_51, %c0_52] : memref<1x8x16xf32, #tpu.memory_space<vmem>>, vector<1x1x16xf32>
    %67 = vector.shape_cast %66 : vector<1x1x16xf32> to vector<1x16xf32>
    %68 = vector.shape_cast %65 : vector<1x16xf32> to vector<1x1x16xf32>
    tpu.vector_store %arg9[%c0_50, %c4_51, %c0_52], %68 {strides = array<i32>} : memref<1x8x16xf32, #tpu.memory_space<vmem>>, vector<1x1x16xf32>,
    %c0_53 = arith.constant 0 : index
    %c5 = arith.constant 5 : index
    %c0_54 = arith.constant 0 : index
    %69 = vector.load %arg9[%c0_53, %c5, %c0_54] : memref<1x8x16xf32, #tpu.memory_space<vmem>>, vector<1x1x16xf32>
    %70 = vector.shape_cast %69 : vector<1x1x16xf32> to vector<1x16xf32>
    %71 = arith.addf %70, %36 : vector<1x16xf32>
    %c0_55 = arith.constant 0 : index
    %c5_56 = arith.constant 5 : index
    %c0_57 = arith.constant 0 : index
    %72 = vector.load %arg9[%c0_55, %c5_56, %c0_57] : memref<1x8x16xf32, #tpu.memory_space<vmem>>, vector<1x1x16xf32>
    %73 = vector.shape_cast %72 : vector<1x1x16xf32> to vector<1x16xf32>
    %74 = vector.shape_cast %71 : vector<1x16xf32> to vector<1x1x16xf32>
    tpu.vector_store %arg9[%c0_55, %c5_56, %c0_57], %74 {strides = array<i32>} : memref<1x8x16xf32, #tpu.memory_space<vmem>>, vector<1x1x16xf32>,
    %c0_58 = arith.constant 0 : index
    %c6 = arith.constant 6 : index
    %c0_59 = arith.constant 0 : index
    %75 = vector.load %arg9[%c0_58, %c6, %c0_59] : memref<1x8x16xf32, #tpu.memory_space<vmem>>, vector<1x1x16xf32>
    %76 = vector.shape_cast %75 : vector<1x1x16xf32> to vector<1x16xf32>
    %77 = arith.addf %76, %38 : vector<1x16xf32>
    %c0_60 = arith.constant 0 : index
    %c6_61 = arith.constant 6 : index
    %c0_62 = arith.constant 0 : index
    %78 = vector.load %arg9[%c0_60, %c6_61, %c0_62] : memref<1x8x16xf32, #tpu.memory_space<vmem>>, vector<1x1x16xf32>
    %79 = vector.shape_cast %78 : vector<1x1x16xf32> to vector<1x16xf32>
    %80 = vector.shape_cast %77 : vector<1x16xf32> to vector<1x1x16xf32>
    tpu.vector_store %arg9[%c0_60, %c6_61, %c0_62], %80 {strides = array<i32>} : memref<1x8x16xf32, #tpu.memory_space<vmem>>, vector<1x1x16xf32>,
    return
  }
  func.func @transform_0(%arg0: i32, %arg1: i32) -> (i32, i32, i32) {
    %c0_i32 = arith.constant 0 : i32
    %c0_i32_0 = arith.constant 0 : i32
    return %arg0, %arg1, %c0_i32 : i32, i32, i32
  }
  func.func @transform_1(%arg0: i32, %arg1: i32) -> (i32, i32, i32) {
    %c0_i32 = arith.constant 0 : i32
    %c0_i32_0 = arith.constant 0 : i32
    return %arg0, %arg1, %c0_i32 : i32, i32, i32
  }
  func.func @transform_2(%arg0: i32, %arg1: i32) -> (i32, i32, i32) {
    %c0_i32 = arith.constant 0 : i32
    %c0_i32_0 = arith.constant 0 : i32
    return %arg0, %arg1, %c0_i32 : i32, i32, i32
  }
  func.func @transform_3(%arg0: i32, %arg1: i32) -> (i32, i32, i32) {
    %c0_i32 = arith.constant 0 : i32
    %c0_i32_0 = arith.constant 0 : i32
    return %arg0, %arg1, %c0_i32 : i32, i32, i32
  }
  func.func @transform_4(%arg0: i32, %arg1: i32) -> (i32, i32, i32) {
    %c0_i32 = arith.constant 0 : i32
    %c0_i32_0 = arith.constant 0 : i32
    return %arg0, %arg1, %c0_i32 : i32, i32, i32
  }
  func.func @transform_5(%arg0: i32, %arg1: i32) -> (i32, i32, i32) {
    %c0_i32 = arith.constant 0 : i32
    %c0_i32_0 = arith.constant 0 : i32
    return %arg0, %arg1, %c0_i32 : i32, i32, i32
  }
  func.func @transform_6(%arg0: i32, %arg1: i32) -> (i32, i32, i32) {
    %c0_i32 = arith.constant 0 : i32
    %c0_i32_0 = arith.constant 0 : i32
    return %arg0, %arg1, %c0_i32 : i32, i32, i32
  }
  func.func @transform_7(%arg0: i32, %arg1: i32) -> (i32, i32, i32) {
    %c0_i32 = arith.constant 0 : i32
    %c0_i32_0 = arith.constant 0 : i32
    %c0_i32_1 = arith.constant 0 : i32
    return %arg0, %c0_i32, %c0_i32_0 : i32, i32, i32
  }
}

</mosaic_0001>

<bundles_post_ra>
// kernel: l1_leaky_dice_loss.1
= control target key start
LH: loop header
LB: loop body
LE: loop exit
PB: predicated region body
PF: predicated region fallthrough
CT: control target
= control target key end

     0   :  { %s1725_s0 = inlined_call_operand.hbm [shape: f32[2,16,16], index: 0, kind: input, shape index: {}]   ;;  %s1726_s1 = inlined_call_operand.hbm [shape: f32[2,16,16], index: 1, kind: input, shape index: {}]   ;;  %s1727_s2 = inlined_call_operand.hbm [shape: f32[2,16,16], index: 2, kind: input, shape index: {}]   ;;  %s1728_s3 = inlined_call_operand.hbm [shape: f32[2,16,16], index: 3, kind: input, shape index: {}]   ;;  %s1729_s4 = inlined_call_operand.hbm [shape: f32[2,16,16], index: 4, kind: input, shape index: {}]   ;;  %s1730_s5 = inlined_call_operand.vmem [shape: f32[2,16,16], index: 5, kind: input, shape index: {}]   ;;  %s1731_s6 = inlined_call_operand.hbm [shape: f32[2,16,16], index: 6, kind: input, shape index: {}]   ;;  %s1732_s7 = inlined_call_operand.vmem [shape: f32[2,8,16], index: 7, kind: output, shape index: {}]  }
   0x1   :  { %1743 = sst [smem:[#allocation20_spill]] %s1725_s0 }
   0x2   :  { %1744 = sst [smem:[#allocation21_spill]] %s1726_s1 }
   0x3   :  { %1745 = sst [smem:[#allocation22_spill]] %s1728_s3 }
   0x4   :  { %1746 = sst [smem:[#allocation23_spill]] %s1730_s5 }
   0x5   :  { %1747 = sst [smem:[#allocation24_spill]] %s1732_s7 }
   0x6   :  { %12 = vsyncpa [#allocation3], 0 }
   0x7   :  { %14 = vsyncpa [#allocation3 + $0x1], 0 }
   0x8   :  { %15 = vsyncpa [#allocation5], 0 }
   0x9   :  { %17 = vsyncpa [#allocation5 + $0x1], 0 }
   0xa   :  { %18 = vsyncpa [#allocation8], 0 }
   0xb   :  { %20 = vsyncpa [#allocation8 + $0x1], 0 }
   0xc   :  { %21 = vsyncpa [#allocation11], 0 }
   0xd   :  { %23 = vsyncpa [#allocation11 + $0x1], 0  ;;  %s1326_s24 = smov 0   ;;  %s1328_s25 = smov 0  }
   0xe   :  { %s1330_s26 = smov 0   ;;  %s1332_s27 = smov 0  }
   0xf   :  { %s1334_s28 = smov 0   ;;  %s1336_s29 = smov 0  }
  0x10 LB: > { %1748 = sst [smem:[#allocation16_spill]] %s1263_s26  ;;  %s1733_s30 = sadd.s32 4294967295, %s1275_s29   ;;  %s1275_s29 = sphi %s1336_s29, %s29_s29   ;;  %s1271_s28 = sphi %s1334_s28, %s1771_s28   ;;  %s1267_s27 = sphi %s1332_s27, %s1774_s27   ;;  %s1263_s26 = sphi %s1330_s26, %s1769_s26   ;;  %s1259_s25 = sphi %s1328_s25, %s1773_s25   ;;  %s1255_s24 = sphi %s1326_s24, %s1772_s24  }
  0x11   : > { %1749 = sst [smem:[#allocation17_spill]] %s1271_s28  ;;  %s41_s8 = sadd.s32 1, %s1271_s28 }
  0x12   : > { %p43_p0 = scmp.ge.s32.totalorder %s41_s8, 2  ;;  %s50_s9 = sadd.s32 1, %s1263_s26 }
  0x13   : > { %p57_p1 = scmp.ne.s32.totalorder %s1263_s26, %s1259_s25  ;;  %p58_p2 = scmp.eq.s32.totalorder %s1275_s29, 0 }
  0x14   : > { %s1776_s8 = smov (%p43_p0, %s41_s8), 0  ;;  %p63_p4 = scmp.ne.s32.totalorder %s1259_s25, %s1255_s24 }
  0x15   : > { %1750 = sst [smem:[#allocation18_spill]] %s1776_s8  ;;  %p59_p3 = por %p58_p2, %p57_p1 }
  0x16   : > { %s45_s10 = ssub.s32 %s1271_s28, %s1776_s8  ;;  %p64_p5 = scmp.eq.s32.totalorder %s1733_s30, 0 }
  0x17   : > { %p48_p6 = scmp.eq.s32.totalorder %s45_s10, 0  ;;  %p981_p8 = scmp.lt.s32.totalorder %s1275_s29, 2 }
  0x18   : > { %p1367_p7 = por %p64_p5, %p63_p4  ;;  %s1376_s13 = sand.u32 1, %s1263_s26  }
  0x19   : > { %s1373_s12 = scalar_select %p48_p6, %s1263_s26, %s50_s9  }
  0x1a   : > { %s1751_s11 = scalar_select %p1367_p7, 1, 0 }
  0x1b   : > { %1752 = sst [smem:[#allocation19_spill]] %s1373_s12  ;;  %s1379_s14 = sshll.u32 %s1271_s28, 8 }
  0x1c   : > { %s1382_s15 = sshll.u32 %s1376_s13, 4  ;;  %p1384_p9 = pnand %p981_p8, %p59_p3 }
  0x1d   : > { %s1734_s17 = sand.u32 1, %s1275_s29   ;;  %s1754_s1 = sld [smem:[#allocation21_spill]] }
  0x1e   : > { %s308_s21 = scalar_lea.vmem [#allocation4], %s1382_s15  ;;  %s1401_s23 = scalar_lea.sflag [#allocation5], %s1734_s17 }
  0x1f   : > { %s317_s22 = sshll.u32 %s308_s21, 4  ;;  %p1407_p12 = pneg %p1384_p9  ;;  %s1396_s22 = int_to_ptr.vmem [resolvable:$true] %s317_s22 }
  0x23   : > { %s1393_s20 = scalar_lea.hbm %s1754_s1, %s1379_s14  ;;  %s1038_s19 = scalar_lea.hbm %s1754_s1, 512 }
  0x24   : > { %s1033_s24 = scalar_lea.hbm %s1393_s20, 256  ;;  %p1039_p1 = scmp.lt.u32.totalorder %s1393_s20, %s1754_s1 }
  0x25   : > { %p1034_p11 = scmp.ne.s32.totalorder %s1393_s20, %s1033_s24  ;;  %p1040_p2 = scmp.lt.u32.totalorder %s1038_s19, %s1033_s24 }
  0x26   : > { %p1042_p4 = scmp.lt.u32.totalorder %s1033_s24, %s1393_s20 }
  0x27   : > { %p1036_p13 = pnand %p1407_p12, %p1034_p11  ;;  %p1041_p3 = por %p1040_p2, %p1039_p1 }
  0x29   : > { %p1037_p0 = pneg %p1036_p13  ;;  %p1043_p5 = por %p1042_p4, %p1041_p3 }
  0x2b   : > { %p1044_p6 = pnand %p1043_p5, %p1037_p0 }
  0x2d   : > { %1047 = shalt.err (!%p1044_p6)
}
  0x2e   : > { %s1048_s17 = scalar_lea.vmem %s1396_s22, 256  ;;  %s1277_s10 = smov [#allocation4]  }
  0x2f   : > { %p1049_p8 = scmp.ne.s32.totalorder %s1396_s22, %s1048_s17  ;;  %s1053_s18 = sshll.u32 %s1277_s10, 4  ;;  %s1054_s18 = int_to_ptr.vmem [resolvable:$false] %s1053_s18 }
  0x30   : > { %s1055_s30 = scalar_lea.vmem %s1054_s18, 512  ;;  %p1056_p10 = scmp.lt.s32.totalorder %s1396_s22, %s1054_s18 }
  0x31   : > { %p1051_p11 = pnand %p1049_p8, %p1407_p12  ;;  %p1057_p7 = scmp.lt.s32.totalorder %s1055_s30, %s1048_s17 }
  0x33   : > { %p1052_p13 = pneg %p1051_p11  ;;  %p1058_p1 = por %p1057_p7, %p1056_p10 }
  0x35   : > { %p1059_p2 = pnand %p1058_p1, %p1052_p13 }
  0x37   : > { %1062 = shalt.err (!%p1059_p2)
}
  0x38   : > { %s1736_s24 = smov 128   ;;  %s1738_s19 = smov 8  }
  0x39   : > { %968 = dma.hbm_to_vmem [thread:$0]  (!%p1384_p9), %s1393_s20, 256, %s1396_s22, %s1401_s23, %s1736_s24, %s1736_s24, %s1738_s19  }
  0x3a   : > { %p430_p7 = scmp.lt.s32.totalorder %s1275_s29, 3  ;;  %s1756_s3 = sld [smem:[#allocation22_spill]] }
  0x3b   : > { %p1757_p10 = scmp.ge.s32.totalorder %s1275_s29, 1  ;;  %s354_s30 = scalar_lea.vmem [#allocation7], %s1382_s15 }
  0x3c   : > { %s363_s1 = sshll.u32 %s354_s30, 4  ;;  %s1759_s20 = sand.u32 1, %s1275_s29   ;;  %s1448_s1 = int_to_ptr.vmem [resolvable:$true] %s363_s1 }
  0x3d   : > { %p1443_p0 = pnand %p1757_p10, %p430_p7  ;;  %s1452_s22 = scalar_lea.sflag [#allocation8], %s1759_s20 }
  0x3f   : > { %s1758_s18 = scalar_select %p1443_p0, 1, 0 }
  0x40   : > { %s1439_s10 = scalar_lea.hbm %s1756_s3, %s1379_s14  ;;  %s1068_s19 = scalar_lea.hbm %s1756_s3, 512 }
  0x41   : > { %s1063_s24 = scalar_lea.hbm %s1439_s10, 256  ;;  %p1069_p6 = scmp.lt.u32.totalorder %s1439_s10, %s1756_s3 }
  0x42   : > { %p1064_p3 = scmp.ne.s32.totalorder %s1439_s10, %s1063_s24  ;;  %p1070_p8 = scmp.lt.u32.totalorder %s1068_s19, %s1063_s24 }
  0x43   : > { %p1072_p13 = scmp.lt.u32.totalorder %s1063_s24, %s1439_s10 }
  0x44   : > { %p1066_p4 = pnand %p1064_p3, %p1407_p12  ;;  %p1071_p11 = por %p1070_p8, %p1069_p6 }
  0x46   : > { %p1067_p5 = pneg %p1066_p4  ;;  %p1073_p1 = por %p1072_p13, %p1071_p11 }
  0x48   : > { %p1074_p2 = pnand %p1073_p1, %p1067_p5 }
  0x4a   : > { %1077 = shalt.err (!%p1074_p2)
}
  0x4b   : > { %s1078_s30 = scalar_lea.vmem %s1448_s1, 256  ;;  %s1280_s20 = smov [#allocation7]  }
  0x4c   : > { %p1079_p7 = scmp.ne.s32.totalorder %s1448_s1, %s1078_s30  ;;  %s1083_s17 = sshll.u32 %s1280_s20, 4  ;;  %s1084_s17 = int_to_ptr.vmem [resolvable:$false] %s1083_s17 }
  0x4d   : > { %s1085_s28 = scalar_lea.vmem %s1084_s17, 512  ;;  %p1086_p4 = scmp.lt.s32.totalorder %s1448_s1, %s1084_s17 }
  0x4e   : > { %p1081_p10 = pnand %p1079_p7, %p1407_p12  ;;  %p1087_p0 = scmp.lt.s32.totalorder %s1085_s28, %s1078_s30 }
  0x50   : > { %p1082_p3 = pneg %p1081_p10  ;;  %p1088_p6 = por %p1087_p0, %p1086_p4 }
  0x52   : > { %p1089_p8 = pnand %p1088_p6, %p1082_p3 }
  0x54   : > { %1092 = shalt.err (!%p1089_p8)
}
  0x55   : > { %s1760_s8 = smov 8   ;;  %s1761_s24 = smov 128  }
  0x56   : > { %974 = dma.hbm_to_vmem [thread:$0]  (!%p1384_p9), %s1439_s10, 256, %s1448_s1, %s1452_s22, %s1761_s24, %s1761_s24, %s1760_s8  }
  0x57   : > { %s1762_s0 = sld [smem:[#allocation20_spill]]  ;;  %s285_s20 = scalar_lea.vmem [#allocation2], %s1382_s15 }
  0x58   : > { %s294_s17 = sshll.u32 %s285_s20, 4  ;;  %s1492_s12 = scalar_lea.hbm %s1727_s2, %s1379_s14  ;;  %s1486_s17 = int_to_ptr.vmem [resolvable:$true] %s294_s17 }
  0x59   : > { %s282_s26 = scalar_lea.sflag [#allocation3], %s1376_s13 }
  0x5d   : > { %s1483_s30 = scalar_lea.hbm %s1762_s0, %s1379_s14  ;;  %s1098_s21 = scalar_lea.hbm %s1762_s0, 512 }
  0x5e   : > { %s1093_s1 = scalar_lea.hbm %s1483_s30, 256  ;;  %p1099_p13 = scmp.lt.u32.totalorder %s1483_s30, %s1762_s0 }
  0x5f   : > { %p1094_p0 = scmp.ne.s32.totalorder %s1483_s30, %s1093_s1  ;;  %p1100_p1 = scmp.lt.u32.totalorder %s1098_s21, %s1093_s1 }
  0x60   : > { %p1102_p7 = scmp.lt.u32.totalorder %s1093_s1, %s1483_s30 }
  0x61   : > { %p1096_p5 = pnand %p1094_p0, %p1407_p12  ;;  %p1101_p2 = por %p1100_p1, %p1099_p13 }
  0x63   : > { %p1097_p11 = pneg %p1096_p5  ;;  %p1103_p10 = por %p1102_p7, %p1101_p2 }
  0x65   : > { %p1104_p3 = pnand %p1103_p10, %p1097_p11 }
  0x67   : > { %1107 = shalt.err (!%p1104_p3)
}
  0x68   : > { %s1108_s3 = scalar_lea.vmem %s1486_s17, 256  ;;  %s1281_s20 = smov [#allocation2]  }
  0x69   : > { %p1109_p4 = scmp.ne.s32.totalorder %s1486_s17, %s1108_s3  ;;  %s1113_s28 = sshll.u32 %s1281_s20, 4  ;;  %s1114_s28 = int_to_ptr.vmem [resolvable:$false] %s1113_s28 }
  0x6a   : > { %s1115_s5 = scalar_lea.vmem %s1114_s28, 512  ;;  %p1116_p0 = scmp.lt.s32.totalorder %s1486_s17, %s1114_s28 }
  0x6b   : > { %p1111_p6 = pnand %p1109_p4, %p1407_p12  ;;  %p1117_p5 = scmp.lt.s32.totalorder %s1115_s5, %s1108_s3 }
  0x6d   : > { %p1112_p8 = pneg %p1111_p6  ;;  %p1118_p13 = por %p1117_p5, %p1116_p0 }
  0x6f   : > { %p1119_p1 = pnand %p1118_p13, %p1112_p8 }
  0x71   : > { %1122 = shalt.err (!%p1119_p1)
}
  0x72   : > { %965 = dma.hbm_to_vmem [thread:$0]  (!%p1384_p9), %s1483_s30, 256, %s1486_s17, %s282_s26, %s1761_s24, %s1761_s24, %s1760_s8  }
  0x73   : > { %s331_s7 = scalar_lea.vmem [#allocation6], %s1382_s15  ;;  %s1528_s21 = scalar_lea.hbm %s1729_s4, %s1379_s14 }
  0x74   : > { %s340_s1 = sshll.u32 %s331_s7, 4  ;;  %s1123_s3 = scalar_lea.hbm %s1492_s12, 256  ;;  %s1522_s1 = int_to_ptr.vmem [resolvable:$true] %s340_s1 }
  0x75   : > { %p1124_p11 = scmp.ne.s32.totalorder %s1492_s12, %s1123_s3  ;;  %s1128_s5 = scalar_lea.hbm %s1727_s2, 512 }
  0x76   : > { %p1129_p10 = scmp.lt.u32.totalorder %s1492_s12, %s1727_s2  ;;  %p1130_p3 = scmp.lt.u32.totalorder %s1128_s5, %s1123_s3 }
  0x77   : > { %p1126_p2 = pnand %p1124_p11, %p1407_p12  ;;  %p1132_p6 = scmp.lt.u32.totalorder %s1123_s3, %s1492_s12 }
  0x78   : > { %p1131_p4 = por %p1130_p3, %p1129_p10 }
  0x79   : > { %p1127_p7 = pneg %p1126_p2 }
  0x7a   : > { %p1133_p8 = por %p1132_p6, %p1131_p4 }
  0x7c   : > { %p1134_p0 = pnand %p1133_p8, %p1127_p7 }
  0x7e   : > { %1137 = shalt.err (!%p1134_p0)
}
  0x7f   : > { %s1138_s30 = scalar_lea.vmem %s1522_s1, 256  ;;  %s1282_s17 = smov [#allocation6]  }
  0x80   : > { %p1139_p5 = scmp.ne.s32.totalorder %s1522_s1, %s1138_s30  ;;  %s1143_s7 = sshll.u32 %s1282_s17, 4  ;;  %s1144_s7 = int_to_ptr.vmem [resolvable:$false] %s1143_s7 }
  0x81   : > { %s1145_s0 = scalar_lea.vmem %s1144_s7, 512  ;;  %p1146_p11 = scmp.lt.s32.totalorder %s1522_s1, %s1144_s7 }
  0x82   : > { %p1141_p13 = pnand %p1139_p5, %p1407_p12  ;;  %p1147_p2 = scmp.lt.s32.totalorder %s1145_s0, %s1138_s30 }
  0x84   : > { %p1142_p1 = pneg %p1141_p13  ;;  %p1148_p10 = por %p1147_p2, %p1146_p11 }
  0x86   : > { %p1149_p3 = pnand %p1148_p10, %p1142_p1 }
  0x88   : > { %1152 = shalt.err (!%p1149_p3)
}
  0x89   : > { %971 = dma.hbm_to_vmem [thread:$0]  (!%p1384_p9), %s1492_s12, 256, %s1522_s1, %s1401_s23, %s1761_s24, %s1761_s24, %s1760_s8  }
  0x8a   : > { %s377_s10 = scalar_lea.vmem [#allocation9], %s1382_s15  ;;  %s1153_s3 = scalar_lea.hbm %s1528_s21, 256 }
  0x8b   : > { %s386_s19 = sshll.u32 %s377_s10, 4  ;;  %p1154_p7 = scmp.ne.s32.totalorder %s1528_s21, %s1153_s3  ;;  %s1556_s19 = int_to_ptr.vmem [resolvable:$true] %s386_s19 }
  0x8c   : > { %s1158_s5 = scalar_lea.hbm %s1729_s4, 512  ;;  %p1159_p8 = scmp.lt.u32.totalorder %s1528_s21, %s1729_s4 }
  0x8d   : > { %p1156_p4 = pnand %p1154_p7, %p1407_p12  ;;  %p1160_p0 = scmp.lt.u32.totalorder %s1158_s5, %s1153_s3 }
  0x8e   : > { %p1162_p13 = scmp.lt.u32.totalorder %s1153_s3, %s1528_s21 }
  0x8f   : > { %p1157_p6 = pneg %p1156_p4  ;;  %p1161_p5 = por %p1160_p0, %p1159_p8 }
  0x91   : > { %p1163_p1 = por %p1162_p13, %p1161_p5 }
  0x93   : > { %p1164_p11 = pnand %p1163_p1, %p1157_p6 }
  0x95   : > { %1167 = shalt.err (!%p1164_p11)
}
  0x96   : > { %s1168_s12 = scalar_lea.vmem %s1556_s19, 256  ;;  %s1283_s23 = smov [#allocation9]  }
  0x97   : > { %p1169_p2 = scmp.ne.s32.totalorder %s1556_s19, %s1168_s12  ;;  %s1173_s1 = sshll.u32 %s1283_s23, 4  ;;  %s1174_s1 = int_to_ptr.vmem [resolvable:$false] %s1173_s1 }
  0x98   : > { %s1175_s17 = scalar_lea.vmem %s1174_s1, 512  ;;  %p1176_p7 = scmp.lt.s32.totalorder %s1556_s19, %s1174_s1 }
  0x99   : > { %p1171_p10 = pnand %p1169_p2, %p1407_p12  ;;  %p1177_p4 = scmp.lt.s32.totalorder %s1175_s17, %s1168_s12 }
  0x9b   : > { %p1172_p3 = pneg %p1171_p10  ;;  %p1178_p8 = por %p1177_p4, %p1176_p7 }
  0x9d   : > { %p1179_p0 = pnand %p1178_p8, %p1172_p3 }
  0x9f   : > { %1182 = shalt.err (!%p1179_p0)
}
  0xa0   : > { %977 = dma.hbm_to_vmem [thread:$0]  (!%p1384_p9), %s1528_s21, 256, %s1556_s19, %s1452_s22, %s1761_s24, %s1761_s24, %s1760_s8  }
  0xa1   : > { %s1587_s10 = scalar_lea.hbm %s1731_s6, %s1379_s14  ;;  %s413_s3 = scalar_lea.vmem [#allocation10], %s1382_s15 }
  0xa2   : > { %s422_s20 = sshll.u32 %s413_s3, 4  ;;  %s410_s28 = scalar_lea.sflag [#allocation11], %s1376_s13  ;;  %s1590_s20 = int_to_ptr.vmem [resolvable:$true] %s422_s20 }
  0xa3   : > { %s1183_s5 = scalar_lea.hbm %s1587_s10, 256  ;;  %s1188_s19 = scalar_lea.hbm %s1731_s6, 512 }
  0xa4   : > { %p1184_p6 = scmp.ne.s32.totalorder %s1587_s10, %s1183_s5  ;;  %p1189_p1 = scmp.lt.u32.totalorder %s1587_s10, %s1731_s6 }
  0xa5   : > { %p1190_p11 = scmp.lt.u32.totalorder %s1188_s19, %s1183_s5  ;;  %p1192_p10 = scmp.lt.u32.totalorder %s1183_s5, %s1587_s10 }
  0xa6   : > { %p1186_p5 = pnand %p1184_p6, %p1407_p12 }
  0xa7   : > { %p1191_p2 = por %p1190_p11, %p1189_p1 }
  0xa8   : > { %p1187_p13 = pneg %p1186_p5 }
  0xa9   : > { %p1193_p3 = por %p1192_p10, %p1191_p2 }
  0xab   : > { %p1194_p7 = pnand %p1193_p3, %p1187_p13 }
  0xad   : > { %1197 = shalt.err (!%p1194_p7)
}
  0xae   : > { %s1198_s15 = scalar_lea.vmem %s1590_s20, 256  ;;  %s1284_s30 = smov [#allocation10]  }
  0xaf   : > { %p1199_p4 = scmp.ne.s32.totalorder %s1590_s20, %s1198_s15  ;;  %s1203_s12 = sshll.u32 %s1284_s30, 4  ;;  %s1204_s12 = int_to_ptr.vmem [resolvable:$false] %s1203_s12 }
  0xb0   : > { %s1205_s23 = scalar_lea.vmem %s1204_s12, 512  ;;  %p1206_p6 = scmp.lt.s32.totalorder %s1590_s20, %s1204_s12 }
  0xb1   : > { %p1201_p8 = pnand %p1199_p4, %p1407_p12  ;;  %p1207_p5 = scmp.lt.s32.totalorder %s1205_s23, %s1198_s15 }
  0xb3   : > { %p1202_p0 = pneg %p1201_p8  ;;  %p1208_p1 = por %p1207_p5, %p1206_p6 }
  0xb5   : > { %p1209_p11 = pnand %p1208_p1, %p1202_p0 }
  0xb7   : > { %1212 = shalt.err (!%p1209_p11)
}
  0xb8   : > { %980 = dma.hbm_to_vmem [thread:$0]  (!%p1384_p9), %s1587_s10, 256, %s1590_s20, %s410_s28, %s1761_s24, %s1761_s24, %s1760_s8  }
  0xb9   : > { %p1763_p12 = scmp.ne.s32.totalorder %s1758_s18, 0 }
  0xba   : > { %s436_s9 = sand.u32 (!%p1763_p12), 1, %s1259_s25   ;;  %p1764_p13 = scmp.ne.s32.totalorder (!%p1763_p12), %s1751_s11, 0 }
  0xbb   : > { %434 = sbr.rel (%p1763_p12) target bundleno = 240 (0xf0), region = 48  ;;  %s1622_s1 = sshll.u32 (!%p1763_p12), %s436_s9, 4 }
  0xbc   : > { %s437_s17 = scalar_lea.sflag (!%p1763_p12), [#allocation3], %s436_s9  ;;  %s440_s7 = scalar_lea.vmem (!%p1763_p12), [#allocation2], %s1622_s1 }
  0xc2   : > { %1238 = dma.done.wait (%p1764_p13), %s437_s17, 256  }
  0xc3   : > { %1240 = vsyncadd (%p1764_p13), %s437_s17, 4294967040  ;;  %s1765_s13 = sadd.s32 4294967295, %s1275_s29   ;;  %s449_s8 = scalar_lea.vmem [#allocation4], %s1622_s1 }
  0xc4   : > { %s445_s16 = sand.u32 1, %s1765_s13  }
  0xc5   : > { %s446_s18 = scalar_lea.sflag [#allocation5], %s445_s16 }
  0xc6   : > { %1242 = dma.done.wait (%p1764_p13), %s446_s18, 512  }
  0xc7   : > { %1244 = vsyncadd (%p1764_p13), %s446_s18, 4294966784  ;;  %s458_s24 = scalar_lea.vmem [#allocation6], %s1622_s1  ;;  %s464_s0 = scalar_lea.sflag [#allocation8], %s445_s16 }
  0xc8   : > { %s467_s10 = scalar_lea.vmem [#allocation7], %s1622_s1 }
  0xc9   : > { %1246 = dma.done.wait (%p1764_p13), %s464_s0, 512  }
  0xca   : > { %1248 = vsyncadd (%p1764_p13), %s464_s0, 4294966784  ;;  %s476_s3 = scalar_lea.vmem [#allocation9], %s1622_s1  ;;  %s482_s20 = scalar_lea.sflag [#allocation11], %s436_s9 }
  0xcb   : > { %s485_s28 = scalar_lea.vmem [#allocation10], %s1622_s1 }
  0xcc   : > { %1250 = dma.done.wait (%p1764_p13), %s482_s20, 256  }
  0xcd   : > { %1252 = vsyncadd (%p1764_p13), %s482_s20, 4294967040  ;;  %p555_p9 = scmp.lt.s32.totalorder %s1267_s27, 1  ;;  %s1766_s19 = sld [smem:[#allocation24_spill]]  ;;  %vm573_vm0 = vcmask 130048   ;;  %v1285_v0 = vmov 0.0   ;;  %v575_v1 = vld [vmem:[%s440_s7] sm:$0xff] }
  0xce   : > { %v576_v2 = vld [vmem:[%s440_s7 + $0x8] sm:$0xff]  ;;  %v581_v3 = vld [vmem:[%s467_s10] sm:$0xff]  ;;  %s1767_s30 = sld [smem:[#allocation23_spill]]  ;;  %vm671_vm1 = vcmask 122880  }
  0xcf   : > { %s1778_s27 = smov (!%p555_p9, %s1267_s27), 1  ;;  %v582_v4 = vld [vmem:[%s467_s10 + $0x8] sm:$0xff]  ;;  %v583_v5 = vld [vmem:[%s476_s3] sm:$0xff] }
  0xd0   : > { %s940_s5 = sshll.u32 %s1778_s27, 3  ;;  %s949_s26 = sshll.u32 %s1778_s27, 4  ;;  %v584_v6 = vld [vmem:[%s476_s3 + $0x8] sm:$0xff]  ;;  %v589_v7 = vmul.f32 %v583_v5, %v581_v3  ;;  %v612_v9 = vmul.f32 %v583_v5, %v575_v1  ;;  %v577_v11 = vld [vmem:[%s449_s8] sm:$0xff] }
  0xd1   : > { %v590_v8 = vmul.f32 %v584_v6, %v582_v4  ;;  %v613_v10 = vmul.f32 %v584_v6, %v576_v2  ;;  %v578_v12 = vld [vmem:[%s449_s8 + $0x8] sm:$0xff]  ;;  %v634_v13 = vmul.f32 %v583_v5, %v577_v11  ;;  %v579_v19 = vld [vmem:[%s458_s24] sm:$0xff] }
  0xd2   : > { %v635_v14 = vmul.f32 %v584_v6, %v578_v12  ;;  %v591_v15 = vmul.f32 %v589_v7, %v575_v1  ;;  %v603_v17 = vsel %vm573_vm0, %v589_v7, 0.0  ;;  %v614_v22 = vsel %vm573_vm0, %v612_v9, 0.0  ;;  %v580_v32 = vld [vmem:[%s458_s24 + $0x8] sm:$0xff]  ;;  %v587_v43 = vld [vmem:[%s485_s28] sm:$0xff] }
  0xd3   : > { %s1653_s14 = scalar_lea.vmem %s1766_s19, %s940_s5  ;;  %v592_v16 = vmul.f32 %v590_v8, %v576_v2  ;;  %v604_v18 = vsel %vm573_vm0, %v590_v8, 0.0  ;;  %v615_v23 = vsel %vm573_vm0, %v613_v10, 0.0  ;;  %v623_v24 = vmul.f32 %v589_v7, %v577_v11  ;;  %v588_v52 = vld [vmem:[%s485_s28 + $0x8] sm:$0xff] }
  0xd4   : > { %574 = vst.msk [vmem:[%s1653_s14] sm:$0xff] %vm573_vm0, %v1285_v0  ;;  %s562_s12 = scalar_lea.vmem %s1767_s30, %s949_s26  ;;  %v605_v21 = vadd.f32 %v604_v18, %v603_v17  ;;  %v594_v25 = vsel %vm573_vm0, %v591_v15, 0.0  ;;  %v616_v27 = vadd.f32 %v615_v23, %v614_v22  ;;  %v624_v28 = vmul.f32 %v590_v8, %v578_v12 }
  0xd5   : > { %v585_v20 = vld [vmem:[%s562_s12] sm:$0xff]  ;;  %v595_v26 = vsel %vm573_vm0, %v592_v16, 0.0  ;;  %v625_v31 = vsel %vm573_vm0, %v623_v24, 0.0  ;;  %v586_v33 = vld [vmem:[%s562_s12 + $0x8] sm:$0xff]  ;;  %v636_v37 = vsel %vm573_vm0, %v634_v13, 0.0  ;;  %v637_v38 = vsel %vm573_vm0, %v635_v14, 0.0 }
  0xd6   : > { %v596_v29 = vadd.f32 %v595_v26, %v594_v25  ;;  %v606_v30 = vrot.slane %v605_v21, 4  ;;  %v645_v34 = vsub.f32 %v579_v19, %v585_v20  ;;  %v617_v35 = vrot.slane %v616_v27, 4 }
  0xd7   : > { %v626_v36 = vsel %vm573_vm0, %v624_v28, 0.0  ;;  %v638_v42 = vadd.f32 %v637_v38, %v636_v37  ;;  %v646_v45 = vsub.f32 %v580_v32, %v586_v33  ;;  %v660_v47 = vsel %vm573_vm0, %v587_v43, 0.0 }
  0xd8   : > { %v597_v39 = vrot.slane %v596_v29, 4  ;;  %v607_v40 = vadd.f32 %v606_v30, %v605_v21  ;;  %v627_v41 = vadd.f32 %v626_v36, %v625_v31  ;;  %v618_v44 = vadd.f32 %v617_v35, %v616_v27 }
  0xd9   : > { %v647_v46 = vand.u32 2147483647, %v645_v34  ;;  %v639_v51 = vrot.slane %v638_v42, 4  ;;  %v648_v54 = vand.u32 2147483647, %v646_v45  ;;  %v661_v56 = vsel %vm573_vm0, %v588_v52, 0.0 }
  0xda   : > { %v598_v48 = vadd.f32 %v597_v39, %v596_v29  ;;  %v608_v49 = vrot.slane %v607_v40, 2  ;;  %v628_v50 = vrot.slane %v627_v41, 4  ;;  %v619_v53 = vrot.slane %v618_v44, 2 }
  0xdb   : > { %v649_v55 = vmul.f32 %v647_v46, %v587_v43  ;;  %v640_v60 = vadd.f32 %v639_v51, %v638_v42  ;;  %v650_v62 = vmul.f32 %v648_v54, %v588_v52  ;;  %v662_v0 = vadd.f32 %v661_v56, %v660_v47  ;;  %v673_v5 = vld [vmem:[%s1653_s14 + $0x1] sm:$0x1]  ;;  %v676_v11 = vld [vmem:[%s1653_s14 + $0x2] sm:$0x1]  ;;  %v669_v14 = vld [vmem:[%s1653_s14] sm:$0x1] }
  0xdc   : > { %v599_v57 = vrot.slane %v598_v48, 2  ;;  %v609_v58 = vadd.f32 %v608_v49, %v607_v40  ;;  %v629_v59 = vadd.f32 %v628_v50, %v627_v41  ;;  %v620_v61 = vadd.f32 %v619_v53, %v618_v44  ;;  %v679_v23 = vld [vmem:[%s1653_s14 + $0x3] sm:$0x1]  ;;  %v682_v24 = vld [vmem:[%s1653_s14 + $0x4] sm:$0x1] }
  0xdd   : > { %v651_v63 = vsel %vm573_vm0, %v649_v55, 0.0  ;;  %v641_v4 = vrot.slane %v640_v60, 2  ;;  %v652_v7 = vsel %vm573_vm0, %v650_v62, 0.0  ;;  %v663_v8 = vrot.slane %v662_v0, 4  ;;  %v688_v36 = vld [vmem:[%s1653_s14 + $0x6] sm:$0x1] }
  0xde   : > { %v600_v1 = vadd.f32 %v599_v57, %v598_v48  ;;  %v610_v2 = vrot.slane %v609_v58, 1  ;;  %v630_v3 = vrot.slane %v629_v59, 2  ;;  %v621_v6 = vrot.slane %v620_v61, 1  ;;  %v685_v41 = vld [vmem:[%s1653_s14 + $0x5] sm:$0x1] }
  0xdf   : > { %v642_v13 = vadd.f32 %v641_v4, %v640_v60  ;;  %v653_v16 = vadd.f32 %v652_v7, %v651_v63  ;;  %v664_v17 = vadd.f32 %v663_v8, %v662_v0 }
  0xe0   : > { %v601_v9 = vrot.slane %v600_v1, 1  ;;  %v611_v10 = vadd.f32 %v610_v2, %v609_v58  ;;  %v631_v12 = vadd.f32 %v630_v3, %v629_v59  ;;  %v622_v15 = vadd.f32 %v621_v6, %v620_v61 }
  0xe1   : > { %v643_v21 = vrot.slane %v642_v13, 1  ;;  %v654_v25 = vrot.slane %v653_v16, 4  ;;  %v665_v26 = vrot.slane %v664_v17, 2 }
  0xe2   : > { %v602_v18 = vadd.f32 %v601_v9, %v600_v1  ;;  %v674_v19 = vadd.f32 %v673_v5, %v611_v10  ;;  %v632_v20 = vrot.slane %v631_v12, 1  ;;  %v677_v22 = vadd.f32 %v676_v11, %v622_v15 }
  0xe3   : > { %v644_v29 = vadd.f32 %v643_v21, %v642_v13  ;;  %v655_v30 = vadd.f32 %v654_v25, %v653_v16  ;;  %v666_v31 = vadd.f32 %v665_v26, %v664_v17 }
  0xe4   : > { %v670_v27 = vadd.f32 %v669_v14, %v602_v18  ;;  %675 = vst.msk [vmem:[%s1653_s14 + $0x1] sm:$0x1] %vm671_vm1, %v674_v19  ;;  %v633_v28 = vadd.f32 %v632_v20, %v631_v12  ;;  %678 = vst.msk [vmem:[%s1653_s14 + $0x2] sm:$0x1] %vm671_vm1, %v677_v22 }
  0xe5   : > { %v683_v33 = vadd.f32 %v682_v24, %v644_v29  ;;  %v656_v34 = vrot.slane %v655_v30, 2  ;;  %v667_v35 = vrot.slane %v666_v31, 1 }
  0xe6   : > { %672 = vst.msk [vmem:[%s1653_s14] sm:$0x1] %vm671_vm1, %v670_v27  ;;  %v680_v32 = vadd.f32 %v679_v23, %v633_v28 }
  0xe7   : > { %684 = vst.msk [vmem:[%s1653_s14 + $0x4] sm:$0x1] %vm671_vm1, %v683_v33  ;;  %v657_v37 = vadd.f32 %v656_v34, %v655_v30  ;;  %v668_v38 = vadd.f32 %v667_v35, %v666_v31 }
  0xe8   : > { %681 = vst.msk [vmem:[%s1653_s14 + $0x3] sm:$0x1] %vm671_vm1, %v680_v32 }
  0xe9   : > { %v658_v39 = vrot.slane %v657_v37, 1  ;;  %v689_v40 = vadd.f32 %v688_v36, %v668_v38 }
  0xeb   : > { %v659_v42 = vadd.f32 %v658_v39, %v657_v37  ;;  %690 = vst.msk [vmem:[%s1653_s14 + $0x6] sm:$0x1] %vm671_vm1, %v689_v40 }
  0xed   : > { %v686_v43 = vadd.f32 %v685_v41, %v659_v42 }
  0xef   : > { %687 = vst.msk [vmem:[%s1653_s14 + $0x5] sm:$0x1] %vm671_vm1, %v686_v43 }
  0xf0 PF: > { %s29_s29 = sadd.s32 1, %s1275_s29   ;;  %s1768_s27 = sld [smem:[#allocation16_spill]] }
  0xf1   : > { %p26_p2 = scmp.ge.s32.totalorder %s29_s29, 4   ;;  %s1769_s26 = sld [smem:[#allocation19_spill]] }
  0xf2   : > { %s1770_s23 = sld [smem:[#allocation17_spill]]  ;;  %s1771_s28 = sld [smem:[#allocation18_spill]] }
  0xf3   : > { %s1772_s24 = smov %s1259_s25  ;;  %28 = sbr.rel (!%p26_p2) target bundleno = 16 (0x10), region = 156 }
  0xf6   : > { %s1773_s25 = smov %s1768_s27 }
  0xf8   : > { %s1774_s27 = smov %s1770_s23 }
  0xfa   :  { %710 = vsyncpa [#allocation3], 1 }
  0xfb   :  { %712 = vsyncpa [#allocation3 + $0x1], 1 }
  0xfc   :  { %713 = vsyncpa [#allocation5], 1 }
  0xfd   :  { %715 = vsyncpa [#allocation5 + $0x1], 1 }
  0xfe   :  { %716 = vsyncpa [#allocation8], 1 }
  0xff   :  { %718 = vsyncpa [#allocation8 + $0x1], 1 }
 0x100   :  { %719 = vsyncpa [#allocation11], 1 }
 0x101   :  { %721 = vsyncpa [#allocation11 + $0x1], 1 }

</bundles_post_ra>
